<compile_context>
chip_gen: v6e
topology: v6e:2x2x1
jax: 0.10.0
libtpu: 0.0.40
codegen_flags: <defaults>
</compile_context>

<pallas_src>
import jax
import jax.numpy as jnp
from jax.experimental import pallas as pl
from jax.experimental.pallas import tpu as pltpu


def _round_up(x, m):
    return (x + m - 1) // m * m


def _vmem_budget_bytes():
    """Returns (usable VMEM budget, physical capacity), leaving headroom for
    compiler-internal scratch / semaphores."""
    try:
        cap = int(pltpu.get_tpu_info().vmem_capacity_bytes)
    except Exception:
        cap = 64 * 1024 * 1024
    return max(cap - 16 * 1024 * 1024, 32 * 1024 * 1024), cap


# ---------------------------------------------------------------------------
# Fused kernel: decoder -> proj -> generator, (row-tile, vocab-tile) grid.
# ---------------------------------------------------------------------------
def _seq2seq_head_kernel(x_ref, wdec_ref, bdec_ref, wproj_ref, bproj_ref,
                         wgen_ref, bgen_ref, out_ref, p_ref):
    """x_ref    : (tm, Hp)   row tile of flattened hidden states (compute dtype)
    wdec_ref : (Hp, Hp)   decoder weight (stored (in, out), i.e. torch W^T)
    bdec_ref : (1, Hp)    decoder bias (f32)
    wproj_ref: (Hp, Hp)   proj weight
    bproj_ref: (1, Hp)    proj bias (f32)
    wgen_ref : (Hp, tn)   generator weight, vocab tile
    bgen_ref : (1, tn)    generator bias, vocab tile (f32)
    out_ref  : (tm, tn)   output logits tile (f32)
    p_ref    : (tm, Hp)   VMEM scratch: decoder+proj result for this row tile
    """
    j = pl.program_id(1)

    # Compute the decoder+proj intermediate once per row tile (first vocab tile)
    # and reuse it for all vocab tiles of the same row tile.  Only correct while
    # the vocab axis is the innermost, sequential ("arbitrary") grid axis.
    @pl.when(j == 0)
    def _():
        x = x_ref[...]
        h = jnp.dot(x, wdec_ref[...],
                    preferred_element_type=jnp.float32) + bdec_ref[...]
        p = jnp.dot(h.astype(wproj_ref.dtype), wproj_ref[...],
                    preferred_element_type=jnp.float32) + bproj_ref[...]
        p_ref[...] = p.astype(p_ref.dtype)

    logits = jnp.dot(p_ref[...], wgen_ref[...],
                     preferred_element_type=jnp.float32) + bgen_ref[...]
    out_ref[...] = logits.astype(out_ref.dtype)


# ---------------------------------------------------------------------------
# Generic K-tiled linear (split fallback for very large H, e.g. v7x / H>=4096).
# ---------------------------------------------------------------------------
def _linear_kernel(x_ref, w_ref, b_ref, out_ref, acc_ref):
    k = pl.program_id(2)

    @pl.when(k == 0)
    def _():
        acc_ref[...] = jnp.zeros_like(acc_ref)

    acc_ref[...] += jnp.dot(x_ref[...], w_ref[...],
                            preferred_element_type=jnp.float32)

    @pl.when(k == pl.num_programs(2) - 1)
    def _():
        out_ref[...] = (acc_ref[...] + b_ref[...]).astype(out_ref.dtype)


def _linear(x2d, w, b, *, tm, tn, tk, out_dtype, vmem_limit):
    """y = x2d @ w + b with a (rows, cols, K) grid; K (contraction) must be a
    multiple of 128 (guaranteed by prepare_params' H padding)."""
    M, K = x2d.shape
    N = w.shape[1]
    m_align = 8
    tm_ = _round_up(min(tm, _round_up(M, m_align)), m_align)
    tn_ = N if N <= tn else _round_up(tn, 128)
    tk_ = min(tk, K)
    while K % tk_ != 0:           # K is a multiple of 128 by construction
        tk_ -= 128
    grid = (pl.cdiv(M, tm_), pl.cdiv(N, tn_), K // tk_)

    return pl.pallas_call(
        _linear_kernel,
        out_shape=jax.ShapeDtypeStruct((M, N), out_dtype),
        grid_spec=pltpu.PrefetchScalarGridSpec(
            num_scalar_prefetch=0,
            grid=grid,
            in_specs=[
                pl.BlockSpec((tm_, tk_), lambda i, j, k: (i, k)),
                pl.BlockSpec((tk_, tn_), lambda i, j, k: (k, j)),
                pl.BlockSpec((1, tn_), lambda i, j, k: (0, j)),
            ],
            out_specs=pl.BlockSpec((tm_, tn_), lambda i, j, k: (i, j)),
            scratch_shapes=[pltpu.VMEM((tm_, tn_), jnp.float32)],
        ),
        compiler_params=pltpu.CompilerParams(
            dimension_semantics=("parallel", "parallel", "arbitrary"),
            vmem_limit_bytes=vmem_limit,
        ),
    )(x2d, w, b)


# ---------------------------------------------------------------------------
# Parameter preprocessing (cast + H-padding), hoisted out of the per-call path.
# ---------------------------------------------------------------------------
def prepare_params(params, *, compute_dtype=jnp.bfloat16):
    """Cast weights to the MXU compute dtype and zero-pad only the contraction
    dim H to a multiple of 128.  Call once and reuse across forward calls."""
    H = params["w_dec"].shape[0]
    V = params["w_gen"].shape[1]
    Hp = _round_up(H, 128)
    ph = Hp - H
    return {
        "w_dec":  jnp.pad(params["w_dec"].astype(compute_dtype), ((0, ph), (0, ph))),
        "b_dec":  jnp.pad(params["b_dec"].astype(jnp.float32).reshape(1, H),
                          ((0, 0), (0, ph))),
        "w_proj": jnp.pad(params["w_proj"].astype(compute_dtype), ((0, ph), (0, ph))),
        "b_proj": jnp.pad(params["b_proj"].astype(jnp.float32).reshape(1, H),
                          ((0, 0), (0, ph))),
        "w_gen":  jnp.pad(params["w_gen"].astype(compute_dtype), ((0, ph), (0, 0))),
        "b_gen":  params["b_gen"].astype(jnp.float32).reshape(1, V),
        "H": H, "V": V, "Hp": Hp,
        "compute_dtype": jnp.dtype(compute_dtype),
    }


# ---------------------------------------------------------------------------
# Forward.
# ---------------------------------------------------------------------------
def seq2seq_head_forward(hidden_states, prep, *, tile_m=None, tile_n=512,
                         tile_k=512, force_split=None):
    """hidden_states: [B, S, H] float32 -> logits [B, S, V] float32.

    `prep` comes from prepare_params().  Matmuls run on the MXU in the chosen
    compute dtype with f32 accumulation; bias adds and the output stay f32.
    """
    B, S, H = hidden_states.shape
    assert H == prep["H"], "hidden dim mismatch with prepared params"
    V, Hp = prep["V"], prep["Hp"]
    cdtype = prep["compute_dtype"]
    itemsize = cdtype.itemsize
    M = B * S

    budget, cap = _vmem_budget_bytes()
    if tile_m is None:
        # v5e/v6e (128 MiB VMEM): large row tiles toward the w_gen-stream ridge;
        # v7x (64 MiB): smaller to leave room for the resident H x H weights.
        tile_m = 512 if cap >= 96 * 1024 * 1024 else 384

    m_align = 8 if itemsize >= 4 else 16   # sublane packing: f32 -> 8, bf16 -> 16
    tm = _round_up(min(tile_m, _round_up(M, m_align)), m_align)
    tn = V if V <= tile_n else _round_up(tile_n, 128)
    grid_j = pl.cdiv(V, tn)
    gen_buf = max(1, min(3, grid_j))       # deeper pipeline on the streamed w_gen

    def fused_vmem(tm_):
        return (2 * tm_ * Hp * itemsize            # x row tile (double-buffered)
                + 2 * Hp * Hp * itemsize           # w_dec + w_proj (single-buffered)
                + 4 * Hp * 4                       # b_dec + b_proj (f32)
                + gen_buf * (Hp * tn * itemsize + tn * 4)   # w_gen / b_gen tiles
                + 2 * tm_ * tn * 4                 # output tile (double-buffered)
                + tm_ * Hp * itemsize)             # p scratch

    while fused_vmem(tm) > budget and tm > 2 * m_align:
        tm = max(m_align, _round_up(tm // 2, m_align))
    grid_i = pl.cdiv(M, tm)

    use_split = (force_split if force_split is not None
                 else fused_vmem(tm) > budget)

    # Activations: cast to compute dtype; zero-pad only the contraction dim H.
    x2d = hidden_states.reshape(M, H).astype(cdtype)
    if Hp != H:
        x2d = jnp.pad(x2d, ((0, 0), (0, Hp - H)))

    if use_split:
        # Big-H fallback (e.g. v7x with H>=4096): three K-tiled linears so no
        # H x H weight has to be fully VMEM-resident.
        h = _linear(x2d, prep["w_dec"], prep["b_dec"], tm=tile_m,
                    tn=min(512, Hp), tk=tile_k, out_dtype=cdtype,
                    vmem_limit=budget)
        p = _linear(h, prep["w_proj"], prep["b_proj"], tm=tile_m,
                    tn=min(512, Hp), tk=tile_k, out_dtype=cdtype,
                    vmem_limit=budget)
        logits2d = _linear(p, prep["w_gen"], prep["b_gen"], tm=tile_m,
                           tn=tile_n, tk=tile_k, out_dtype=jnp.float32,
                           vmem_limit=budget)
        return logits2d.reshape(B, S, V)

    # Grid-invariant operands: constant index_map, single-buffered (no refetch,
    # half the VMEM footprint vs the default double buffer).
    def _invariant(shape):
        return pl.BlockSpec(shape, lambda i, j: (0, 0),
                            pipeline_mode=pl.Buffered(buffer_count=1))

    flops = 2 * M * (2 * Hp * Hp + Hp * V)
    bytes_accessed = (M * Hp * itemsize
                      + 2 * Hp * Hp * itemsize + 4 * Hp * 4
                      + grid_i * (Hp * V * itemsize + V * 4)   # w_gen refetched per row tile
                      + M * V * 4)
    cost = pl.CostEstimate(flops=flops, transcendentals=0,
                           bytes_accessed=bytes_accessed)

    out2d = pl.pallas_call(
        _seq2seq_head_kernel,
        out_shape=jax.ShapeDtypeStruct((M, V), jnp.float32),
        grid_spec=pltpu.PrefetchScalarGridSpec(
            num_scalar_prefetch=0,
            grid=(grid_i, grid_j),
            in_specs=[
                pl.BlockSpec((tm, Hp), lambda i, j: (i, 0)),   # activations row tile
                _invariant((Hp, Hp)),                          # w_dec
                _invariant((1, Hp)),                           # b_dec
                _invariant((Hp, Hp)),                          # w_proj
                _invariant((1, Hp)),                           # b_proj
                pl.BlockSpec((Hp, tn), lambda i, j: (0, j),    # w_gen vocab tile
                             pipeline_mode=pl.Buffered(buffer_count=gen_buf)),
                pl.BlockSpec((1, tn), lambda i, j: (0, j),     # b_gen vocab tile
                             pipeline_mode=pl.Buffered(buffer_count=gen_buf)),
            ],
            out_specs=pl.BlockSpec((tm, tn), lambda i, j: (i, j)),
            scratch_shapes=[pltpu.VMEM((tm, Hp), cdtype)],
        ),
        compiler_params=pltpu.CompilerParams(
            dimension_semantics=("parallel", "arbitrary"),
            vmem_limit_bytes=budget,
        ),
        cost_estimate=cost,
    )(x2d, prep["w_dec"], prep["b_dec"], prep["w_proj"], prep["b_proj"],
      prep["w_gen"], prep["b_gen"])

    return out2d.reshape(B, S, V)


# ---------------------------------------------------------------------------
# Synthetic parameters + pure-JAX reference.
# ---------------------------------------------------------------------------
def init_params(key, hidden_dim, vocab_size):
    """Weights stored (in, out), i.e. the transpose of torch.nn.Linear's
    (out, in), so the kernel computes x @ W."""
    k = jax.random.split(key, 6)
    scale_h = 1.0 / jnp.sqrt(hidden_dim)
    return {
        "w_dec":  jax.random.uniform(k[0], (hidden_dim, hidden_dim), jnp.float32,
                                     -scale_h, scale_h),
        "b_dec":  jax.random.uniform(k[1], (1, hidden_dim), jnp.float32,
                                     -scale_h, scale_h),
        "w_proj": jax.random.uniform(k[2], (hidden_dim, hidden_dim), jnp.float32,
                                     -scale_h, scale_h),
        "b_proj": jax.random.uniform(k[3], (1, hidden_dim), jnp.float32,
                                     -scale_h, scale_h),
        "w_gen":  jax.random.uniform(k[4], (hidden_dim, vocab_size), jnp.float32,
                                     -scale_h, scale_h),
        "b_gen":  jax.random.uniform(k[5], (1, vocab_size), jnp.float32,
                                     -scale_h, scale_h),
    }


def reference_forward(hidden_states, params):
    """Pure-JAX reference matching the PyTorch forward semantics (f32)."""
    h = hidden_states @ params["w_dec"] + params["b_dec"]
    p = h @ params["w_proj"] + params["b_proj"]
    return p @ params["w_gen"] + params["b_gen"]


if __name__ == "__main__":
    key = jax.random.PRNGKey(0)
    k1, k2, k3, k4, k5, k6 = jax.random.split(key, 6)

    # --- primary test: shapes implied by the module (B, S, H, V) ---
    B, S, H, V = 2, 8, 32, 64
    hidden_states = jax.random.normal(k1, (B, S, H), dtype=jnp.float32)
    params = init_params(k2, H, V)
    ref = reference_forward(hidden_states, params)

    # f32 MXU operands: strict check against the reference.
    prep_f32 = prepare_params(params, compute_dtype=jnp.float32)
    logits_f32 = jax.block_until_ready(seq2seq_head_forward(hidden_states, prep_f32))
    assert logits_f32.shape == (B, S, V)
    assert jnp.allclose(logits_f32, ref, atol=1e-4, rtol=1e-4), "f32 mismatch vs reference"

    # Default bf16 MXU operands (f32 accumulation): looser tolerance.
    prep_bf16 = prepare_params(params, compute_dtype=jnp.bfloat16)
    logits_bf16 = jax.block_until_ready(seq2seq_head_forward(hidden_states, prep_bf16))
    assert jnp.allclose(logits_bf16, ref, atol=5e-2, rtol=5e-2), "bf16 mismatch vs reference"

    # --- multi-tile grid with ragged row AND vocab edges (exercises Pallas
    # edge-block masking and the pl.when(j == 0) scratch-reuse path) ---
    B2, S2, H2, V2 = 2, 13, 48, 320
    hs2 = jax.random.normal(k3, (B2, S2, H2), dtype=jnp.float32)
    params2 = init_params(k4, H2, V2)
    ref2 = reference_forward(hs2, params2)
    prep2 = prepare_params(params2, compute_dtype=jnp.float32)
    logits2 = jax.block_until_ready(
        seq2seq_head_forward(hs2, prep2, tile_m=16, tile_n=128))
    assert logits2.shape == (B2, S2, V2)
    assert jnp.allclose(logits2, ref2, atol=1e-4, rtol=1e-4), "multi-tile mismatch vs reference"

    # --- split path (three K-tiled linears), the big-H / v7x VMEM fallback ---
    B3, S3, H3, V3 = 2, 10, 160, 192
    hs3 = jax.random.normal(k5, (B3, S3, H3), dtype=jnp.float32)
    params3 = init_params(k6, H3, V3)
    ref3 = reference_forward(hs3, params3)
    prep3 = prepare_params(params3, compute_dtype=jnp.float32)
    logits3 = jax.block_until_ready(
        seq2seq_head_forward(hs3, prep3, tile_m=16, tile_n=128, tile_k=128,
                             force_split=True))
    assert logits3.shape == (B3, S3, V3)
    assert jnp.allclose(logits3, ref3, atol=1e-4, rtol=1e-4), "split-path mismatch vs reference"

    print("KERNEL_OK")
</pallas_src>

<mosaic_0001>
module attributes {stable_mosaic.version = 11 : i64} {
  func.func @_seq2seq_head_kernel(%arg0: i32, %arg1: i32, %arg2: memref<16x128xf32, #tpu.memory_space<vmem>>, %arg3: memref<128x128xf32, #tpu.memory_space<vmem>>, %arg4: memref<1x128xf32, #tpu.memory_space<vmem>>, %arg5: memref<128x128xf32, #tpu.memory_space<vmem>>, %arg6: memref<1x128xf32, #tpu.memory_space<vmem>>, %arg7: memref<128x64xf32, #tpu.memory_space<vmem>>, %arg8: memref<1x64xf32, #tpu.memory_space<vmem>>, %arg9: memref<16x64xf32, #tpu.memory_space<vmem>>, %arg10: memref<16x128xf32, #tpu.memory_space<vmem>>) attributes {dimension_semantics = [#tpu.dimension_semantics<parallel>, #tpu.dimension_semantics<arbitrary>], iteration_bounds = array<i64: 1, 1>, scalar_prefetch = 0 : i64, scratch_operands = 1 : i64, tpu.core_type = #tpu.core_type<tc>, window_params = [{transform_indices = @transform_0, window_bounds = array<i64: 16, 128>}, {pipeline_mode = #tpu.pipeline_mode<synchronous>, transform_indices = @transform_1, window_bounds = array<i64: 128, 128>}, {pipeline_mode = #tpu.pipeline_mode<synchronous>, transform_indices = @transform_2, window_bounds = array<i64: 1, 128>}, {pipeline_mode = #tpu.pipeline_mode<synchronous>, transform_indices = @transform_3, window_bounds = array<i64: 128, 128>}, {pipeline_mode = #tpu.pipeline_mode<synchronous>, transform_indices = @transform_4, window_bounds = array<i64: 1, 128>}, {pipeline_mode = #tpu.pipeline_mode<synchronous>, transform_indices = @transform_5, window_bounds = array<i64: 128, 64>}, {pipeline_mode = #tpu.pipeline_mode<synchronous>, transform_indices = @transform_6, window_bounds = array<i64: 1, 64>}, {transform_indices = @transform_7, window_bounds = array<i64: 16, 64>}]} {
    %c0_i32 = arith.constant 0 : i32
    %0 = arith.cmpi eq, %arg1, %c0_i32 : i32
    %1 = arith.extui %0 : i1 to i32
    %c0_i32_0 = arith.constant 0 : i32
    %2 = arith.cmpi ne, %1, %c0_i32_0 : i32
    scf.if %2 {
      %c0_8 = arith.constant 0 : index
      %c0_9 = arith.constant 0 : index
      %10 = vector.load %arg2[%c0_8, %c0_9] : memref<16x128xf32, #tpu.memory_space<vmem>>, vector<16x128xf32>
      %c0_10 = arith.constant 0 : index
      %c0_11 = arith.constant 0 : index
      %11 = vector.load %arg3[%c0_10, %c0_11] : memref<128x128xf32, #tpu.memory_space<vmem>>, vector<128x128xf32>
      %cst_12 = arith.constant dense<0.000000e+00> : vector<16x128xf32>
      %12 = tpu.matmul %10, %11, %cst_12 {dimension_numbers = #tpu.dot_dimension_numbers<[1], [0], [0], [1], [0, 0, 1, 1], [], []>} : vector<16x128xf32>, vector<128x128xf32>, vector<16x128xf32> -> vector<16x128xf32>
      %c0_13 = arith.constant 0 : index
      %c0_14 = arith.constant 0 : index
      %13 = vector.load %arg4[%c0_13, %c0_14] : memref<1x128xf32, #tpu.memory_space<vmem>>, vector<1x128xf32>
      %14 = vector.broadcast %13 : vector<1x128xf32> to vector<16x128xf32>
      %15 = arith.addf %12, %14 : vector<16x128xf32>
      %c0_15 = arith.constant 0 : index
      %c0_16 = arith.constant 0 : index
      %16 = vector.load %arg5[%c0_15, %c0_16] : memref<128x128xf32, #tpu.memory_space<vmem>>, vector<128x128xf32>
      %cst_17 = arith.constant dense<0.000000e+00> : vector<16x128xf32>
      %17 = tpu.matmul %15, %16, %cst_17 {dimension_numbers = #tpu.dot_dimension_numbers<[1], [0], [0], [1], [0, 0, 1, 1], [], []>} : vector<16x128xf32>, vector<128x128xf32>, vector<16x128xf32> -> vector<16x128xf32>
      %c0_18 = arith.constant 0 : index
      %c0_19 = arith.constant 0 : index
      %18 = vector.load %arg6[%c0_18, %c0_19] : memref<1x128xf32, #tpu.memory_space<vmem>>, vector<1x128xf32>
      %19 = vector.broadcast %18 : vector<1x128xf32> to vector<16x128xf32>
      %20 = arith.addf %17, %19 : vector<16x128xf32>
      %c0_20 = arith.constant 0 : index
      %c0_21 = arith.constant 0 : index
      %21 = vector.load %arg10[%c0_20, %c0_21] : memref<16x128xf32, #tpu.memory_space<vmem>>, vector<16x128xf32>
      tpu.vector_store %arg10[%c0_20, %c0_21], %20 {strides = array<i32>} : memref<16x128xf32, #tpu.memory_space<vmem>>, vector<16x128xf32>,
    } else {
    }
    %c0 = arith.constant 0 : index
    %c0_1 = arith.constant 0 : index
    %3 = vector.load %arg10[%c0, %c0_1] : memref<16x128xf32, #tpu.memory_space<vmem>>, vector<16x128xf32>
    %c0_2 = arith.constant 0 : index
    %c0_3 = arith.constant 0 : index
    %4 = vector.load %arg7[%c0_2, %c0_3] : memref<128x64xf32, #tpu.memory_space<vmem>>, vector<128x64xf32>
    %cst = arith.constant dense<0.000000e+00> : vector<16x64xf32>
    %5 = tpu.matmul %3, %4, %cst {dimension_numbers = #tpu.dot_dimension_numbers<[1], [0], [0], [1], [0, 0, 1, 1], [], []>} : vector<16x128xf32>, vector<128x64xf32>, vector<16x64xf32> -> vector<16x64xf32>
    %c0_4 = arith.constant 0 : index
    %c0_5 = arith.constant 0 : index
    %6 = vector.load %arg8[%c0_4, %c0_5] : memref<1x64xf32, #tpu.memory_space<vmem>>, vector<1x64xf32>
    %7 = vector.broadcast %6 : vector<1x64xf32> to vector<16x64xf32>
    %8 = arith.addf %5, %7 : vector<16x64xf32>
    %c0_6 = arith.constant 0 : index
    %c0_7 = arith.constant 0 : index
    %9 = vector.load %arg9[%c0_6, %c0_7] : memref<16x64xf32, #tpu.memory_space<vmem>>, vector<16x64xf32>
    tpu.vector_store %arg9[%c0_6, %c0_7], %8 {strides = array<i32>} : memref<16x64xf32, #tpu.memory_space<vmem>>, vector<16x64xf32>,
    return
  }
  func.func @transform_0(%arg0: i32, %arg1: i32) -> (i32, i32) {
    %c0_i32 = arith.constant 0 : i32
    %c0_i32_0 = arith.constant 0 : i32
    return %arg0, %c0_i32 : i32, i32
  }
  func.func @transform_1(%arg0: i32, %arg1: i32) -> (i32, i32) {
    %c0_i32 = arith.constant 0 : i32
    %c0_i32_0 = arith.constant 0 : i32
    %c0_i32_1 = arith.constant 0 : i32
    return %c0_i32, %c0_i32_0 : i32, i32
  }
  func.func @transform_2(%arg0: i32, %arg1: i32) -> (i32, i32) {
    %c0_i32 = arith.constant 0 : i32
    %c0_i32_0 = arith.constant 0 : i32
    %c0_i32_1 = arith.constant 0 : i32
    return %c0_i32, %c0_i32_0 : i32, i32
  }
  func.func @transform_3(%arg0: i32, %arg1: i32) -> (i32, i32) {
    %c0_i32 = arith.constant 0 : i32
    %c0_i32_0 = arith.constant 0 : i32
    %c0_i32_1 = arith.constant 0 : i32
    return %c0_i32, %c0_i32_0 : i32, i32
  }
  func.func @transform_4(%arg0: i32, %arg1: i32) -> (i32, i32) {
    %c0_i32 = arith.constant 0 : i32
    %c0_i32_0 = arith.constant 0 : i32
    %c0_i32_1 = arith.constant 0 : i32
    return %c0_i32, %c0_i32_0 : i32, i32
  }
  func.func @transform_5(%arg0: i32, %arg1: i32) -> (i32, i32) {
    %c0_i32 = arith.constant 0 : i32
    %c0_i32_0 = arith.constant 0 : i32
    return %c0_i32, %arg1 : i32, i32
  }
  func.func @transform_6(%arg0: i32, %arg1: i32) -> (i32, i32) {
    %c0_i32 = arith.constant 0 : i32
    %c0_i32_0 = arith.constant 0 : i32
    return %c0_i32, %arg1 : i32, i32
  }
  func.func @transform_7(%arg0: i32, %arg1: i32) -> (i32, i32) {
    %c0_i32 = arith.constant 0 : i32
    return %arg0, %arg1 : i32, i32
  }
}

</mosaic_0001>

<bundles_post_ra>
// kernel: tpu_custom_call.1
= control target key start
LH: loop header
LB: loop body
LE: loop exit
PB: predicated region body
PF: predicated region fallthrough
CT: control target
= control target key end

     0   :  { %12 = vsyncpa [#allocation4], 0  ;;  %s742_s0 = inlined_call_operand.vmem [shape: f32[16,128], index: 0, kind: input, shape index: {}]   ;;  %s743_s1 = inlined_call_operand.vmem [shape: f32[128,128], index: 1, kind: input, shape index: {}]   ;;  %s744_s2 = inlined_call_operand.vmem [shape: f32[1,128], index: 2, kind: input, shape index: {}]   ;;  %s745_s3 = inlined_call_operand.hbm [shape: f32[128,128], index: 3, kind: input, shape index: {}]   ;;  %s746_s4 = inlined_call_operand.vmem [shape: f32[1,128], index: 4, kind: input, shape index: {}]   ;;  %s747_s5 = inlined_call_operand.vmem [shape: f32[128,64], index: 5, kind: input, shape index: {}]   ;;  %s748_s6 = inlined_call_operand.vmem [shape: f32[1,64], index: 6, kind: input, shape index: {}]   ;;  %s749_s7 = inlined_call_operand.hbm [shape: f32[16,64], index: 7, kind: output, shape index: {}]  }
   0x1   :  { %13 = vsyncpa [#allocation5], 0  ;;  %s575_s24 = smov [#allocation3]  }
   0x2   :  { %s25_s25 = sshll.u32 %s575_s24, 4  ;;  %s26_s25 = int_to_ptr.vmem [resolvable:$true] %s25_s25 }
   0x3   :  { %s539_s26 = scalar_lea.vmem %s26_s25, 2048  ;;  %p544_p1 = scmp.lt.s32.totalorder %s26_s25, %s26_s25 }
   0x4   :  { %p540_p0 = scmp.ne.s32.totalorder %s26_s25, %s539_s26  ;;  %p545_p2 = scmp.lt.s32.totalorder %s539_s26, %s539_s26 }
   0x6   :  { %p546_p3 = por %p545_p2, %p544_p1 }
   0x8   :  { %p547_p4 = pnand %p546_p3, %p540_p0 }
   0xa   :  { %550 = shalt.err (!%p547_p4)
}
   0xb   :  { %s576_s27 = smov 128   ;;  %s577_s28 = smov 8  }
   0xc   :  { %31 = dma.hbm_to_vmem [thread:$0]  %s745_s3, 2048, %s26_s25, [#allocation4], %s576_s27, %s576_s27, %s577_s28  }
   0xd   :  { %571 = dma.done.wait [#allocation4], 2048  }
   0xe   :  { %572 = vsyncadd [#allocation4], 4294965248  ;;  %v62_v0 = vld [vmem:[%s743_s1 + $0x78] sm:$0xff]  ;;  %v61_v1 = vld [vmem:[%s743_s1 + $0x70] sm:$0xff]  ;;  %vm345_vm0 = vcmask 523264   ;;  %s578_s11 = smov [#allocation6]  }
   0xf   :  { %422 = vmatprep.subr.mxu0 %v62_v0  ;;  %v60_v2 = vld [vmem:[%s743_s1 + $0x68] sm:$0xff]  ;;  %v59_v3 = vld [vmem:[%s743_s1 + $0x60] sm:$0xff]  ;;  %v58_v5 = vld [vmem:[%s743_s1 + $0x58] sm:$0xff] }
  0x10   :  { %423 = vmatpush3.msra.mxu0 %v62_v0  ;;  %v45_v4 = vld [vmem:[%s742_s0] sm:$0xff]  ;;  %v160_v6 = vld [vmem:[#allocation3 + $0x78] sm:$0xff]  ;;  %v159_v7 = vld [vmem:[#allocation3 + $0x70] sm:$0xff] }
  0x11   :  { %424 = vmatprep.subr.mxu0 %v61_v1  ;;  %454 = vmatprep.mubr.f32.mxu0 %v45_v4  ;;  %v57_v8 = vld [vmem:[%s743_s1 + $0x50] sm:$0xff]  ;;  %v158_v9 = vld [vmem:[#allocation3 + $0x68] sm:$0xff]  ;;  %v157_v11 = vld [vmem:[#allocation3 + $0x60] sm:$0xff] }
  0x12   :  { %425 = vmatpush3.msra.mxu0 %v61_v1  ;;  %457 = vmatprep.subr.mxu1 %v160_v6  ;;  %v56_v10 = vld [vmem:[%s743_s1 + $0x48] sm:$0xff]  ;;  %v55_v12 = vld [vmem:[%s743_s1 + $0x40] sm:$0xff]  ;;  %v156_v13 = vld [vmem:[#allocation3 + $0x58] sm:$0xff] }
  0x13   :  { %426 = vmatprep.subr.mxu0 %v60_v2  ;;  %458 = vmatpush3.msra.mxu1 %v160_v6  ;;  %v54_v14 = vld [vmem:[%s743_s1 + $0x38] sm:$0xff]  ;;  %v155_v15 = vld [vmem:[#allocation3 + $0x50] sm:$0xff]  ;;  %v154_v17 = vld [vmem:[#allocation3 + $0x48] sm:$0xff] }
  0x14   :  { %427 = vmatpush3.msra.mxu0 %v60_v2  ;;  %459 = vmatprep.subr.mxu1 %v159_v7  ;;  %v53_v16 = vld [vmem:[%s743_s1 + $0x30] sm:$0xff]  ;;  %v52_v18 = vld [vmem:[%s743_s1 + $0x28] sm:$0xff]  ;;  %v153_v19 = vld [vmem:[#allocation3 + $0x40] sm:$0xff] }
  0x15   :  { %428 = vmatprep.subr.mxu0 %v59_v3  ;;  %460 = vmatpush3.msra.mxu1 %v159_v7  ;;  %v51_v20 = vld [vmem:[%s743_s1 + $0x20] sm:$0xff]  ;;  %v152_v21 = vld [vmem:[#allocation3 + $0x38] sm:$0xff]  ;;  %v151_v23 = vld [vmem:[#allocation3 + $0x30] sm:$0xff] }
  0x16   :  { %429 = vmatpush3.msra.mxu0 %v59_v3  ;;  %461 = vmatprep.subr.mxu1 %v158_v9  ;;  %v50_v22 = vld [vmem:[%s743_s1 + $0x18] sm:$0xff]  ;;  %v49_v24 = vld [vmem:[%s743_s1 + $0x10] sm:$0xff]  ;;  %v150_v25 = vld [vmem:[#allocation3 + $0x28] sm:$0xff] }
  0x17   :  { %430 = vmatprep.subr.mxu0 %v58_v5  ;;  %462 = vmatpush3.msra.mxu1 %v158_v9  ;;  %v48_v26 = vld [vmem:[%s743_s1 + $0x8] sm:$0xff]  ;;  %v149_v27 = vld [vmem:[#allocation3 + $0x20] sm:$0xff]  ;;  %v148_v29 = vld [vmem:[#allocation3 + $0x18] sm:$0xff] }
  0x18   :  { %431 = vmatpush3.msra.mxu0 %v58_v5  ;;  %463 = vmatprep.subr.mxu1 %v157_v11  ;;  %v47_v28 = vld [vmem:[%s743_s1] sm:$0xff]  ;;  %v46_v30 = vld [vmem:[%s742_s0 + $0x8] sm:$0xff]  ;;  %v147_v31 = vld [vmem:[#allocation3 + $0x10] sm:$0xff] }
  0x19   :  { %432 = vmatprep.subr.mxu0 %v57_v8  ;;  %464 = vmatpush3.msra.mxu1 %v157_v11  ;;  %v146_v32 = vld [vmem:[#allocation3 + $0x8] sm:$0xff]  ;;  %v145_v33 = vld [vmem:[#allocation3] sm:$0xff]  ;;  %v262_v34 = vld [vmem:[%s747_s5 + $0x78] sm:$0xff] }
  0x1a   :  { %433 = vmatpush3.msra.mxu0 %v57_v8  ;;  %465 = vmatprep.subr.mxu1 %v156_v13  ;;  %v261_v35 = vld [vmem:[%s747_s5 + $0x70] sm:$0xff]  ;;  %v260_v36 = vld [vmem:[%s747_s5 + $0x68] sm:$0xff]  ;;  %v259_v37 = vld [vmem:[%s747_s5 + $0x60] sm:$0xff] }
  0x1b   :  { %434 = vmatprep.subr.mxu0 %v56_v10  ;;  %466 = vmatpush3.msra.mxu1 %v156_v13  ;;  %v258_v38 = vld [vmem:[%s747_s5 + $0x58] sm:$0xff]  ;;  %v257_v39 = vld [vmem:[%s747_s5 + $0x50] sm:$0xff]  ;;  %v256_v40 = vld [vmem:[%s747_s5 + $0x48] sm:$0xff] }
  0x1c   :  { %435 = vmatpush3.msra.mxu0 %v56_v10  ;;  %467 = vmatprep.subr.mxu1 %v155_v15  ;;  %v255_v41 = vld [vmem:[%s747_s5 + $0x40] sm:$0xff]  ;;  %v254_v42 = vld [vmem:[%s747_s5 + $0x38] sm:$0xff]  ;;  %v253_v43 = vld [vmem:[%s747_s5 + $0x30] sm:$0xff] }
  0x1d   :  { %436 = vmatprep.subr.mxu0 %v55_v12  ;;  %468 = vmatpush3.msra.mxu1 %v155_v15  ;;  %v252_v44 = vld [vmem:[%s747_s5 + $0x28] sm:$0xff]  ;;  %v251_v45 = vld [vmem:[%s747_s5 + $0x20] sm:$0xff]  ;;  %v250_v46 = vld [vmem:[%s747_s5 + $0x18] sm:$0xff] }
  0x1e   :  { %437 = vmatpush3.msra.mxu0 %v55_v12  ;;  %469 = vmatprep.subr.mxu1 %v154_v17  ;;  %v365_v48 = vld [vmem:[%s744_s2] ss:$0 sm:$0xff]  ;;  %v249_v52 = vld [vmem:[%s747_s5 + $0x10] sm:$0xff]  ;;  %v248_v53 = vld [vmem:[%s747_s5 + $0x8] sm:$0xff] }
  0x1f   :  { %438 = vmatprep.subr.mxu0 %v54_v14  ;;  %470 = vmatpush3.msra.mxu1 %v154_v17  ;;  %v247_v54 = vld [vmem:[%s747_s5] sm:$0xff]  ;;  %s353_s5 = sshll.u32 %s578_s11, 4  ;;  %s354_s5 = int_to_ptr.vmem [resolvable:$true] %s353_s5 }
  0x20   :  { %439 = vmatpush3.msra.mxu0 %v54_v14  ;;  %471 = vmatprep.subr.mxu1 %v153_v19  ;;  %v366_v56 = vld [vmem:[%s746_s4] ss:$0 sm:$0xff]  ;;  %s551_s4 = scalar_lea.vmem %s354_s5, 256  ;;  %p556_p6 = scmp.lt.s32.totalorder %s354_s5, %s354_s5 }
  0x21   :  { %440 = vmatprep.subr.mxu0 %v53_v16  ;;  %472 = vmatpush3.msra.mxu1 %v153_v19  ;;  %v367_v60 = vld [vmem:[%s748_s6] ss:$0 sm:$0xff]  ;;  %p552_p5 = scmp.ne.s32.totalorder %s354_s5, %s551_s4  ;;  %p557_p7 = scmp.lt.s32.totalorder %s551_s4, %s551_s4 }
  0x22   :  { %441 = vmatpush3.msra.mxu0 %v53_v16  ;;  %473 = vmatprep.subr.mxu1 %v152_v21 }
  0x23   :  { %442 = vmatprep.subr.mxu0 %v52_v18  ;;  %474 = vmatpush3.msra.mxu1 %v152_v21  ;;  %p558_p8 = por %p557_p7, %p556_p6 }
  0x24   :  { %443 = vmatpush3.msra.mxu0 %v52_v18  ;;  %475 = vmatprep.subr.mxu1 %v151_v23 }
  0x25   :  { %444 = vmatprep.subr.mxu0 %v51_v20  ;;  %476 = vmatpush3.msra.mxu1 %v151_v23  ;;  %p559_p9 = pnand %p558_p8, %p552_p5 }
  0x26   :  { %445 = vmatpush3.msra.mxu0 %v51_v20  ;;  %477 = vmatprep.subr.mxu1 %v150_v25 }
  0x27   :  { %446 = vmatprep.subr.mxu0 %v50_v22  ;;  %478 = vmatpush3.msra.mxu1 %v150_v25 }
  0x28   :  { %447 = vmatpush3.msra.mxu0 %v50_v22  ;;  %479 = vmatprep.subr.mxu1 %v149_v27 }
  0x29   :  { %448 = vmatprep.subr.mxu0 %v49_v24  ;;  %480 = vmatpush3.msra.mxu1 %v149_v27 }
  0x2a   :  { %449 = vmatpush3.msra.mxu0 %v49_v24  ;;  %481 = vmatprep.subr.mxu1 %v148_v29 }
  0x2b   :  { %450 = vmatprep.subr.mxu0 %v48_v26  ;;  %482 = vmatpush3.msra.mxu1 %v148_v29 }
  0x2c   :  { %451 = vmatpush3.msra.mxu0 %v48_v26  ;;  %483 = vmatprep.subr.mxu1 %v147_v31 }
  0x2d   :  { %452 = vmatprep.subr.mxu0 %v47_v28  ;;  %484 = vmatpush3.msra.mxu1 %v147_v31 }
  0x2e   :  { %453 = vmatpush3.msra.mxu0 %v47_v28  ;;  %485 = vmatprep.subr.mxu1 %v146_v32 }
  0x2f   :  { %455 = vmatmul.mubr.f32.vlgmr.msra.gmra.mxu0 %v46_v30  ;;  %486 = vmatpush3.msra.mxu1 %v146_v32 }
  0x30   :  { %487 = vmatprep.subr.mxu1 %v145_v33  ;;  %492 = vmatprep.subr.mxu0 %v262_v34 }
  0x31   :  { %488 = vmatpush3.msra.mxu1 %v145_v33  ;;  %493 = vmatpush3.msra.mxu0 %v262_v34 }
  0x32   :  { %494 = vmatprep.subr.mxu0 %v261_v35 }
  0x33   :  { %495 = vmatpush3.msra.mxu0 %v261_v35 }
  0x34   :  { %496 = vmatprep.subr.mxu0 %v260_v36 }
  0x35   :  { %497 = vmatpush3.msra.mxu0 %v260_v36 }
  0x36   :  { %498 = vmatprep.subr.mxu0 %v259_v37 }
  0x37   :  { %499 = vmatpush3.msra.mxu0 %v259_v37 }
  0x38   :  { %500 = vmatprep.subr.mxu0 %v258_v38 }
  0x39   :  { %501 = vmatpush3.msra.mxu0 %v258_v38 }
  0x3a   :  { %502 = vmatprep.subr.mxu0 %v257_v39 }
  0x3b   :  { %503 = vmatpush3.msra.mxu0 %v257_v39 }
  0x3c   :  { %504 = vmatprep.subr.mxu0 %v256_v40 }
  0x3d   :  { %505 = vmatpush3.msra.mxu0 %v256_v40 }
  0x3e   :  { %506 = vmatprep.subr.mxu0 %v255_v41 }
  0x3f   :  { %507 = vmatpush3.msra.mxu0 %v255_v41 }
  0x40   :  { %508 = vmatprep.subr.mxu0 %v254_v42 }
  0x41   :  { %509 = vmatpush3.msra.mxu0 %v254_v42 }
  0x42   :  { %510 = vmatprep.subr.mxu0 %v253_v43 }
  0x43   :  { %511 = vmatpush3.msra.mxu0 %v253_v43 }
  0x44   :  { %512 = vmatprep.subr.mxu0 %v252_v44 }
  0x45   :  { %513 = vmatpush3.msra.mxu0 %v252_v44 }
  0x46   :  { %514 = vmatprep.subr.mxu0 %v251_v45 }
  0x47   :  { %515 = vmatpush3.msra.mxu0 %v251_v45 }
  0x48   :  { %516 = vmatprep.subr.mxu0 %v250_v46 }
  0x49   :  { %517 = vmatpush3.msra.mxu0 %v250_v46 }
  0x4a   :  { %518 = vmatprep.subr.mxu0 %v249_v52 }
  0x4b   :  { %519 = vmatpush3.msra.mxu0 %v249_v52 }
  0x4c   :  { %520 = vmatprep.subr.mxu0 %v248_v53 }
  0x4d   :  { %521 = vmatpush3.msra.mxu0 %v248_v53 }
  0x4e   :  { %522 = vmatprep.subr.mxu0 %v247_v54 }
  0x4f   :  { %523 = vmatpush3.msra.mxu0 %v247_v54 }
  0xef   :  { %v456_v47 = vpop.f32.mrf.mxu0 }
  0xf0   :  { %v142_v51 = vadd.f32 %v456_v47, %v365_v48 }
  0xf1   :  { %v136_v49 = vpop.f32.mrf.mxu0 }
  0xf2   :  { %v137_v50 = vadd.f32 %v365_v48, %v136_v49 }
  0xf4   :  { %489 = vmatprep.mubr.f32.mxu1 %v137_v50 }
  0xf5   :  { %490 = vmatmul.mubr.f32.vlgmr.msra.gmra.mxu1 %v142_v51 }
 0x1b5   :  { %v491_v55 = vpop.f32.mrf.mxu1 }
 0x1b6   :  { %v240_v59 = vadd.f32 %v491_v55, %v366_v56 }
 0x1b7   :  { %v234_v57 = vpop.f32.mrf.mxu1 }
 0x1b8   :  { %v235_v58 = vadd.f32 %v366_v56, %v234_v57 }
 0x1ba   :  { %524 = vmatprep.mubr.f32.mxu0 %v235_v58 }
 0x1bb   :  { %525 = vmatmul.mubr.f32.vlgmr.msra.gmra.mxu0 %v240_v59 }
 0x27b   :  { %v526_v61 = vpop.f32.mrf.mxu0 }
 0x27c   :  { %v342_v62 = vadd.f32 %v526_v61, %v367_v60 }
 0x27d   :  { %v336_v63 = vpop.f32.mrf.mxu0 }
 0x27e   :  { %v337_v0 = vadd.f32 %v367_v60, %v336_v63  ;;  %347 = vst.msk [vmem:[#allocation6 + $0x8] sm:$0xff] %vm345_vm0, %v342_v62 }
 0x280   :  { %346 = vst.msk [vmem:[#allocation6] sm:$0xff] %vm345_vm0, %v337_v0 }
 0x281   :  { %562 = shalt.err (!%p559_p9)
}
 0x282   :  { %359 = dma.vmem_to_hbm [thread:$0]  %s354_s5, 256, %s749_s7, [#allocation5], %s576_s27, %s576_s27, %s577_s28  }
 0x283   :  { %573 = dma.done.wait [#allocation5], 256  }
 0x284   :  { %574 = vsyncadd [#allocation5], 4294967040 }
 0x285   :  { %363 = vsyncpa [#allocation4], 1 }
 0x286   :  { %364 = vsyncpa [#allocation5], 1 }

</bundles_post_ra>
